<compile_context>
chip_gen: v6e
topology: v6e:2x2x1
jax: 0.10.0
libtpu: 0.0.40
codegen_flags: <defaults>
</compile_context>

<pallas_src>
import functools

import jax
import jax.numpy as jnp
from jax.experimental import pallas as pl
from jax.experimental.pallas import tpu as pltpu

LANE = 128                        # TPU lane width
PAD_N = 256                       # node-count padding granularity (decoupled from tile size)
TM_MAX = 2048                     # row-tile cap
TK_MAX = 1024                     # contraction-tile cap
M_RESIDENT_MAX = 8 * 1024 * 1024  # keep M fully VMEM-resident below this byte size
VMEM_CAP = 60 * 1024 * 1024       # stay under v7x's 64 MiB per-TC VMEM


def _round_up(x, m):
    return (x + m - 1) // m * m


def _largest_divisor(n, cap, step=LANE):
    """Largest multiple of `step` that divides n and is <= cap (n is a multiple of step)."""
    best = step
    d = step
    while d <= min(n, cap):
        if n % d == 0:
            best = d
        d += step
    return best


def pick_tiles(num_nodes):
    """Pad N to a modest multiple of PAD_N (not of the tile) and pick asymmetric TM/TK divisors.
    TM is capped at n_pad//2 so the 'parallel' row axis always has >=2 tiles (megacore / v7x)."""
    n_pad = _round_up(max(num_nodes, PAD_N), PAD_N)
    tm = _largest_divisor(n_pad, min(TM_MAX, max(n_pad // 2, LANE)))
    tk = _largest_divisor(n_pad, TK_MAX)
    return n_pad, tm, tk


def _compiler_params(dimension_semantics, footprint_bytes):
    # VMEM limit derived from the actual tile footprint (2x headroom), floored at the 32 MiB
    # default scoped limit and capped below v7x's 64 MiB physical VMEM.
    limit = int(min(max(2 * footprint_bytes, 32 * 1024 * 1024), VMEM_CAP))
    return pltpu.CompilerParams(
        dimension_semantics=dimension_semantics,
        vmem_limit_bytes=limit,
    )


# ----------------------------- Pallas kernels -----------------------------

def _spmm_kernel(*refs, has_w, has_bias, has_head, m_resident, tk):
    """Tiled acc += A_tile @ M_tile over the (last, 'arbitrary') contraction grid axis.

    Fused epilogue at the last contraction step:
        has_w    : y = acc @ W_block          (per-layer GCN projection fused into the SpMM)
        has_bias : y = relu(y + b)            (f32 bias + ReLU)
        has_head : y = y @ Wp_block + bp      (projection head, last layer only)
    """
    it = iter(refs)
    a_ref = next(it)
    m_ref = next(it)
    w_ref = next(it) if has_w else None
    b_ref = next(it) if has_bias else None
    wp_ref = next(it) if has_head else None
    bp_ref = next(it) if has_head else None
    o_ref = next(it)
    acc_ref = next(it)

    k = pl.program_id(1)

    @pl.when(k == 0)
    def _():
        acc_ref[...] = jnp.zeros_like(acc_ref)

    if m_resident:
        # M is VMEM-resident (constant block index -> DMA'd once); slice the k-th row band.
        start = pl.multiple_of(k * tk, LANE)
        m_tile = m_ref[pl.ds(start, tk), :]
    else:
        m_tile = m_ref[...]
    acc_ref[...] += jnp.dot(a_ref[...], m_tile, preferred_element_type=jnp.float32)

    @pl.when(k == pl.num_programs(1) - 1)
    def _():
        y = acc_ref[...]
        if has_w:
            y = jnp.dot(y.astype(w_ref.dtype), w_ref[...],
                        preferred_element_type=jnp.float32)
        if has_bias:
            y = jnp.maximum(y + b_ref[...], 0.0)
        if has_head:
            y = jnp.dot(y.astype(wp_ref.dtype), wp_ref[...],
                        preferred_element_type=jnp.float32) + bp_ref[...]
        o_ref[...] = y.astype(o_ref.dtype)


def _dense_kernel(x_ref, w_ref, b_ref, o_ref, *, relu):
    """Row-tiled dense: y = x @ w + b (optional ReLU). Only used on the project-first path."""
    y = jnp.dot(x_ref[...], w_ref[...], preferred_element_type=jnp.float32) + b_ref[...]
    if relu:
        y = jnp.maximum(y, 0.0)
    o_ref[...] = y.astype(o_ref.dtype)


# ----------------------------- kernel wrappers -----------------------------

def spmm(a, m, *, w=None, bias=None, head=None, out_dtype=jnp.bfloat16, tm, tk):
    """A_pad (n_pad, n_pad) @ M (n_pad, cols), optionally fused with the per-layer GCN projection
    W (+bias+ReLU) and the final projection head, all in the last-k epilogue."""
    n_pad = a.shape[0]
    cols = m.shape[1]
    m_resident = n_pad * cols * m.dtype.itemsize <= M_RESIDENT_MAX

    in_arrays = [a, m]
    if m_resident:
        m_spec = pl.BlockSpec((n_pad, cols), lambda i, k: (0, 0))  # fetched once, stays resident
    else:
        m_spec = pl.BlockSpec((tk, cols), lambda i, k: (k, 0))
    in_specs = [pl.BlockSpec((tm, tk), lambda i, k: (i, k)), m_spec]

    out_width = cols
    const_bytes = 0
    if w is not None:
        out_width = w.shape[1]
        in_arrays.append(w)
        in_specs.append(pl.BlockSpec(w.shape, lambda i, k: (0, 0)))
        const_bytes += 2 * w.size * w.dtype.itemsize
    if bias is not None:
        in_arrays.append(bias)
        in_specs.append(pl.BlockSpec(bias.shape, lambda i, k: (0, 0)))
        const_bytes += 2 * bias.size * bias.dtype.itemsize
    if head is not None:
        wp, bp = head
        out_width = wp.shape[1]
        in_arrays += [wp, bp]
        in_specs += [pl.BlockSpec(wp.shape, lambda i, k: (0, 0)),
                     pl.BlockSpec(bp.shape, lambda i, k: (0, 0))]
        const_bytes += 2 * (wp.size * wp.dtype.itemsize + bp.size * bp.dtype.itemsize)

    out_itemsize = jnp.dtype(out_dtype).itemsize
    footprint = (
        2 * tm * tk * a.dtype.itemsize                                      # A tiles (double buf)
        + (n_pad * cols if m_resident else 2 * tk * cols) * m.dtype.itemsize  # M operand
        + tm * cols * 4                                                     # f32 accumulator
        + 2 * tm * out_width * out_itemsize                                 # output tiles
        + const_bytes                                                       # weights / biases
    )

    kernel = functools.partial(
        _spmm_kernel,
        has_w=w is not None, has_bias=bias is not None, has_head=head is not None,
        m_resident=m_resident, tk=tk)

    return pl.pallas_call(
        kernel,
        out_shape=jax.ShapeDtypeStruct((n_pad, out_width), out_dtype),
        grid_spec=pltpu.PrefetchScalarGridSpec(
            num_scalar_prefetch=0,
            # NOTE: contraction axis must stay the LAST grid axis and 'arbitrary' — the
            # accumulator pattern (zero at k==0, store at last k) relies on it.
            grid=(n_pad // tm, n_pad // tk),
            in_specs=in_specs,
            out_specs=pl.BlockSpec((tm, out_width), lambda i, k: (i, 0)),
            scratch_shapes=[pltpu.VMEM((tm, cols), jnp.float32)],
        ),
        compiler_params=_compiler_params(("parallel", "arbitrary"), footprint),
    )(*in_arrays)


def dense(x, w, b, *, relu, out_dtype=jnp.bfloat16, tm):
    """Row-tiled x @ w + b (+ReLU); w/b kept whole in VMEM (they are tiny)."""
    n_pad, cin = x.shape
    cout = w.shape[1]
    footprint = (2 * tm * cin * x.dtype.itemsize
                 + 2 * (w.size * w.dtype.itemsize + b.size * b.dtype.itemsize)
                 + 2 * tm * cout * jnp.dtype(out_dtype).itemsize)
    return pl.pallas_call(
        functools.partial(_dense_kernel, relu=relu),
        out_shape=jax.ShapeDtypeStruct((n_pad, cout), out_dtype),
        grid_spec=pltpu.PrefetchScalarGridSpec(
            num_scalar_prefetch=0,
            grid=(n_pad // tm,),
            in_specs=[pl.BlockSpec((tm, cin), lambda i: (i, 0)),
                      pl.BlockSpec(w.shape, lambda i: (0, 0)),
                      pl.BlockSpec(b.shape, lambda i: (0, 0))],
            out_specs=pl.BlockSpec((tm, cout), lambda i: (i, 0)),
        ),
        compiler_params=_compiler_params(("parallel",), footprint),
    )(x, w, b)


# ----------------------------- JAX glue -----------------------------

# TODO(synk): the scatter building the normalized adjacency and the DGI corruption gather stay in
# plain XLA; only the dense per-node-tile math runs in Pallas.
# TODO(synk): sub-bf16 A (int8 on v5e/v6e, fp8 on v7x) with a scale-folded epilogue would halve
# the dominant HBM stream, but needs the activation operand quantized too; kept bf16 here.
def build_padded_adj(edge_index, edge_weight, num_nodes, n_pad):
    """Padded dense D^{-1/2}(A + I)D^{-1/2} in bf16, built directly at the padded size
    (matches torch_geometric gcn_norm, add_self_loops=True). Padded rows/cols are zero."""
    src, dst = edge_index[0], edge_index[1]
    if edge_weight is None:
        edge_weight = jnp.ones(src.shape[0], jnp.float32)
    a = jnp.zeros((n_pad, n_pad), jnp.float32).at[dst, src].add(edge_weight)
    idx = jnp.arange(num_nodes)
    a = a.at[idx, idx].add(1.0)  # self loops (fill value 1) for real nodes only
    deg = a.sum(axis=1)
    dinv = jnp.where(deg > 0.0, jax.lax.rsqrt(deg), 0.0)
    return (dinv[:, None] * a * dinv[None, :]).astype(jnp.bfloat16)


def xavier_uniform(key, fan_in, fan_out):
    bound = jnp.sqrt(6.0 / (fan_in + fan_out))
    return jax.random.uniform(key, (fan_in, fan_out), jnp.float32, -bound, bound)


def init_params(key, in_dim, emb_dim, num_layer):
    dims = [in_dim] + [emb_dim] * num_layer
    keys = jax.random.split(key, num_layer + 1)
    gcn = []
    for i in range(num_layer):
        w = xavier_uniform(keys[i], dims[i], dims[i + 1])  # glorot init, zero bias (PyG default)
        b = jnp.zeros((dims[i + 1],), jnp.float32)
        gcn.append((w, b))
    proj_w = xavier_uniform(keys[num_layer], emb_dim, emb_dim)
    proj_b = jnp.zeros((emb_dim,), jnp.float32)
    return {"gcn": gcn, "proj_w": proj_w, "proj_b": proj_b}


def _pad2(w, r_pad, c_pad):
    return jnp.zeros((r_pad, c_pad), w.dtype).at[: w.shape[0], : w.shape[1]].set(w)


def _block_diag2(w):
    r, c = w.shape
    out = jnp.zeros((2 * r, 2 * c), w.dtype)
    out = out.at[:r, :c].set(w)
    out = out.at[r:, c:].set(w)
    return out


def prepare_kernel_params(params, in_dim, emb_dim, num_layer):
    """Zero-pad feature dims and build block-diagonal weights so one matmul applies W to both the
    positive and the corrupted branch. half=128 when emb_dim > 64 so the fused [pos|neg] width is
    a multiple of 256 (fills v6e/v7x MXU), else 64 (width 128). Padded rows/cols are zero, so
    padding never leaks into real outputs (they are sliced off in the wrapper)."""
    half = 128 if emb_dim > 64 else 64
    dims = [in_dim] + [emb_dim] * num_layer
    dims_pad = [_round_up(d, half) for d in dims]
    layers = []
    for i, (w, b) in enumerate(params["gcn"]):
        fin_p, fout_p = dims_pad[i], dims_pad[i + 1]
        w_block = _block_diag2(_pad2(w, fin_p, fout_p)).astype(jnp.bfloat16)
        b_pad = jnp.zeros((fout_p,), jnp.float32).at[: b.shape[0]].set(b)
        b_cat = jnp.concatenate([b_pad, b_pad]).reshape(1, 2 * fout_p)
        layers.append(dict(
            w_block=w_block, b_cat=b_cat,
            # aggregate-first (projection fused into the SpMM epilogue, one kernel per layer)
            # whenever it doesn't widen the A contraction; otherwise project first.
            aggregate_first=fin_p <= fout_p,
        ))
    e_p = dims_pad[-1]
    wp_block = _block_diag2(_pad2(params["proj_w"], e_p, e_p)).astype(jnp.bfloat16)
    bp_pad = jnp.zeros((e_p,), jnp.float32).at[: params["proj_b"].shape[0]].set(params["proj_b"])
    bp_cat = jnp.concatenate([bp_pad, bp_pad]).reshape(1, 2 * e_p)
    return dict(layers=layers, wp_block=wp_block, bp_cat=bp_cat, dims_pad=dims_pad)


def graphgd_forward(kparams, a_pad, x, perm, *, n, in_dim, emb_dim, tm, tk):
    n_pad = a_pad.shape[0]
    f_pad = kparams["dims_pad"][0]
    e_pad = kparams["dims_pad"][-1]

    # Fuse positive branch and DGI corruption (row-permuted x) along the feature axis:
    # h_cat = [ x | x[perm] ], each half zero-padded to f_pad columns, so A is streamed ONCE.
    x_cor = x[perm]
    h_cat = jnp.zeros((n_pad, 2 * f_pad), jnp.bfloat16)
    h_cat = h_cat.at[:n, :in_dim].set(x.astype(jnp.bfloat16))
    h_cat = h_cat.at[:n, f_pad:f_pad + in_dim].set(x_cor.astype(jnp.bfloat16))

    num_layer = len(kparams["layers"])
    for i, layer in enumerate(kparams["layers"]):
        last = i == num_layer - 1
        head = (kparams["wp_block"], kparams["bp_cat"]) if last else None
        if layer["aggregate_first"]:
            # one kernel per layer: relu((A @ H) @ W + b) [ @ Wp + bp on the last layer ]
            h_cat = spmm(a_pad, h_cat, w=layer["w_block"], bias=layer["b_cat"],
                         head=head, out_dtype=jnp.bfloat16, tm=tm, tk=tk)
        else:
            # A @ (H @ W): projection hoisted out of the A tiling; bias/ReLU(+head) fused in spmm
            zero_b = jnp.zeros((1, layer["w_block"].shape[1]), jnp.float32)
            p = dense(h_cat, layer["w_block"], zero_b, relu=False,
                      out_dtype=jnp.bfloat16, tm=tm)
            h_cat = spmm(a_pad, p, bias=layer["b_cat"], head=head,
                         out_dtype=jnp.bfloat16, tm=tm, tk=tk)

    # Outputs stay bf16 inside the kernels (halves the final HBM write); upcast after slicing.
    pos_h = h_cat[:n, :emb_dim].astype(jnp.float32)
    neg_h = h_cat[:n, e_pad:e_pad + emb_dim].astype(jnp.float32)
    embed_h = pos_h  # .clone() — functional arrays make this a no-op
    return embed_h, pos_h, neg_h


# ----------------------------- main -----------------------------

if __name__ == "__main__":
    in_dim, emb_dim, num_layer = 8, 32, 2
    num_nodes = 16

    key = jax.random.PRNGKey(0)
    k_x, k_params, k_perm = jax.random.split(key, 3)

    x = jax.random.normal(k_x, (num_nodes, in_dim), jnp.float32)

    # small deterministic graph: bidirectional ring
    idx = jnp.arange(num_nodes, dtype=jnp.int32)
    nxt = (idx + 1) % num_nodes
    edge_index = jnp.stack(
        [jnp.concatenate([idx, nxt]), jnp.concatenate([nxt, idx])], axis=0
    )  # (2, 2N)

    n_pad, tm, tk = pick_tiles(num_nodes)
    a_pad = build_padded_adj(edge_index, None, num_nodes, n_pad)

    params = init_params(k_params, in_dim, emb_dim, num_layer)
    kparams = prepare_kernel_params(params, in_dim, emb_dim, num_layer)
    perm = jax.random.permutation(k_perm, num_nodes)  # deterministic corruption permutation

    fwd = jax.jit(functools.partial(
        graphgd_forward, kparams,
        n=num_nodes, in_dim=in_dim, emb_dim=emb_dim, tm=tm, tk=tk))
    embed_h, pos_h, neg_h = fwd(a_pad, x, perm)
    jax.block_until_ready((embed_h, pos_h, neg_h))

    assert embed_h.shape == (num_nodes, emb_dim)
    assert pos_h.shape == (num_nodes, emb_dim)
    assert neg_h.shape == (num_nodes, emb_dim)
    assert bool(jnp.all(jnp.isfinite(pos_h))) and bool(jnp.all(jnp.isfinite(neg_h)))
    print("KERNEL_OK")
</pallas_src>

<mosaic_0001>
module attributes {stable_mosaic.version = 11 : i64} {
  func.func @_spmm_kernel(%arg0: i32, %arg1: i32, %arg2: memref<128x256xbf16, #tpu.memory_space<vmem>>, %arg3: memref<256x128xbf16, #tpu.memory_space<vmem>>, %arg4: memref<128x128xbf16, #tpu.memory_space<vmem>>, %arg5: memref<1x128xf32, #tpu.memory_space<vmem>>, %arg6: memref<128x128xbf16, #tpu.memory_space<vmem>>, %arg7: memref<1x128xf32, #tpu.memory_space<vmem>>, %arg8: memref<128x128xbf16, #tpu.memory_space<vmem>>, %arg9: memref<128x128xf32, #tpu.memory_space<vmem>>) attributes {dimension_semantics = [#tpu.dimension_semantics<parallel>, #tpu.dimension_semantics<arbitrary>], iteration_bounds = array<i64: 2, 1>, scalar_prefetch = 0 : i64, scratch_operands = 1 : i64, tpu.core_type = #tpu.core_type<tc>, window_params = [{transform_indices = @transform_0, window_bounds = array<i64: 128, 256>}, {pipeline_mode = #tpu.pipeline_mode<synchronous>, transform_indices = @transform_1, window_bounds = array<i64: 256, 128>}, {pipeline_mode = #tpu.pipeline_mode<synchronous>, transform_indices = @transform_2, window_bounds = array<i64: 128, 128>}, {pipeline_mode = #tpu.pipeline_mode<synchronous>, transform_indices = @transform_3, window_bounds = array<i64: 1, 128>}, {pipeline_mode = #tpu.pipeline_mode<synchronous>, transform_indices = @transform_4, window_bounds = array<i64: 128, 128>}, {pipeline_mode = #tpu.pipeline_mode<synchronous>, transform_indices = @transform_5, window_bounds = array<i64: 1, 128>}, {transform_indices = @transform_6, window_bounds = array<i64: 128, 128>}]} {
    %c0_i32 = arith.constant 0 : i32
    %0 = arith.cmpi eq, %arg1, %c0_i32 : i32
    %1 = arith.extui %0 : i1 to i32
    %c0_i32_0 = arith.constant 0 : i32
    %2 = arith.cmpi ne, %1, %c0_i32_0 : i32
    scf.if %2 {
      %cst_9 = arith.constant 0.000000e+00 : f32
      %15 = vector.broadcast %cst_9 : f32 to vector<128x128xf32>
      %c0_10 = arith.constant 0 : index
      %c0_11 = arith.constant 0 : index
      %16 = vector.load %arg9[%c0_10, %c0_11] : memref<128x128xf32, #tpu.memory_space<vmem>>, vector<128x128xf32>
      tpu.vector_store %arg9[%c0_10, %c0_11], %15 {strides = array<i32>} : memref<128x128xf32, #tpu.memory_space<vmem>>, vector<128x128xf32>,
    } else {
    }
    %c256_i32 = arith.constant 256 : i32
    %3 = arith.muli %arg1, %c256_i32 : i32
    %4 = tpu.assume_multiple %3, 128 : i32
    %5 = arith.index_cast %4 : i32 to index
    %c0 = arith.constant 0 : index
    %6 = vector.load %arg3[%5, %c0] : memref<256x128xbf16, #tpu.memory_space<vmem>>, vector<256x128xbf16>
    %c0_1 = arith.constant 0 : index
    %c0_2 = arith.constant 0 : index
    %7 = vector.load %arg9[%c0_1, %c0_2] : memref<128x128xf32, #tpu.memory_space<vmem>>, vector<128x128xf32>
    %c0_3 = arith.constant 0 : index
    %c0_4 = arith.constant 0 : index
    %8 = vector.load %arg2[%c0_3, %c0_4] : memref<128x256xbf16, #tpu.memory_space<vmem>>, vector<128x256xbf16>
    %cst = arith.constant dense<0.000000e+00> : vector<128x128xf32>
    %9 = tpu.matmul %8, %6, %cst {dimension_numbers = #tpu.dot_dimension_numbers<[1], [0], [0], [1], [0, 0, 1, 1], [], []>} : vector<128x256xbf16>, vector<256x128xbf16>, vector<128x128xf32> -> vector<128x128xf32>
    %10 = arith.addf %7, %9 : vector<128x128xf32>
    %c0_5 = arith.constant 0 : index
    %c0_6 = arith.constant 0 : index
    %11 = vector.load %arg9[%c0_5, %c0_6] : memref<128x128xf32, #tpu.memory_space<vmem>>, vector<128x128xf32>
    tpu.vector_store %arg9[%c0_5, %c0_6], %10 {strides = array<i32>} : memref<128x128xf32, #tpu.memory_space<vmem>>, vector<128x128xf32>,
    %c0_i32_7 = arith.constant 0 : i32
    %12 = arith.cmpi eq, %arg1, %c0_i32_7 : i32
    %13 = arith.extui %12 : i1 to i32
    %c0_i32_8 = arith.constant 0 : i32
    %14 = arith.cmpi ne, %13, %c0_i32_8 : i32
    scf.if %14 {
      %c0_9 = arith.constant 0 : index
      %c0_10 = arith.constant 0 : index
      %15 = vector.load %arg9[%c0_9, %c0_10] : memref<128x128xf32, #tpu.memory_space<vmem>>, vector<128x128xf32>
      %16 = arith.truncf %15 : vector<128x128xf32> to vector<128x128xbf16>
      %c0_11 = arith.constant 0 : index
      %c0_12 = arith.constant 0 : index
      %17 = vector.load %arg4[%c0_11, %c0_12] : memref<128x128xbf16, #tpu.memory_space<vmem>>, vector<128x128xbf16>
      %cst_13 = arith.constant dense<0.000000e+00> : vector<128x128xf32>
      %18 = tpu.matmul %16, %17, %cst_13 {dimension_numbers = #tpu.dot_dimension_numbers<[1], [0], [0], [1], [0, 0, 1, 1], [], []>} : vector<128x128xbf16>, vector<128x128xbf16>, vector<128x128xf32> -> vector<128x128xf32>
      %c0_14 = arith.constant 0 : index
      %c0_15 = arith.constant 0 : index
      %19 = vector.load %arg5[%c0_14, %c0_15] : memref<1x128xf32, #tpu.memory_space<vmem>>, vector<1x128xf32>
      %20 = vector.broadcast %19 : vector<1x128xf32> to vector<128x128xf32>
      %21 = arith.addf %18, %20 : vector<128x128xf32>
      %cst_16 = arith.constant 0.000000e+00 : f32
      %22 = vector.broadcast %cst_16 : f32 to vector<128x128xf32>
      %23 = arith.maximumf %21, %22 : vector<128x128xf32>
      %24 = arith.truncf %23 : vector<128x128xf32> to vector<128x128xbf16>
      %c0_17 = arith.constant 0 : index
      %c0_18 = arith.constant 0 : index
      %25 = vector.load %arg6[%c0_17, %c0_18] : memref<128x128xbf16, #tpu.memory_space<vmem>>, vector<128x128xbf16>
      %cst_19 = arith.constant dense<0.000000e+00> : vector<128x128xf32>
      %26 = tpu.matmul %24, %25, %cst_19 {dimension_numbers = #tpu.dot_dimension_numbers<[1], [0], [0], [1], [0, 0, 1, 1], [], []>} : vector<128x128xbf16>, vector<128x128xbf16>, vector<128x128xf32> -> vector<128x128xf32>
      %c0_20 = arith.constant 0 : index
      %c0_21 = arith.constant 0 : index
      %27 = vector.load %arg7[%c0_20, %c0_21] : memref<1x128xf32, #tpu.memory_space<vmem>>, vector<1x128xf32>
      %28 = vector.broadcast %27 : vector<1x128xf32> to vector<128x128xf32>
      %29 = arith.addf %26, %28 : vector<128x128xf32>
      %30 = arith.truncf %29 : vector<128x128xf32> to vector<128x128xbf16>
      %c0_22 = arith.constant 0 : index
      %c0_23 = arith.constant 0 : index
      %31 = vector.load %arg8[%c0_22, %c0_23] : memref<128x128xbf16, #tpu.memory_space<vmem>>, vector<128x128xbf16>
      tpu.vector_store %arg8[%c0_22, %c0_23], %30 {strides = array<i32>} : memref<128x128xbf16, #tpu.memory_space<vmem>>, vector<128x128xbf16>,
    } else {
    }
    return
  }
  func.func @transform_0(%arg0: i32, %arg1: i32) -> (i32, i32) {
    %c0_i32 = arith.constant 0 : i32
    return %arg0, %arg1 : i32, i32
  }
  func.func @transform_1(%arg0: i32, %arg1: i32) -> (i32, i32) {
    %c0_i32 = arith.constant 0 : i32
    %c0_i32_0 = arith.constant 0 : i32
    %c0_i32_1 = arith.constant 0 : i32
    return %c0_i32, %c0_i32_0 : i32, i32
  }
  func.func @transform_2(%arg0: i32, %arg1: i32) -> (i32, i32) {
    %c0_i32 = arith.constant 0 : i32
    %c0_i32_0 = arith.constant 0 : i32
    %c0_i32_1 = arith.constant 0 : i32
    return %c0_i32, %c0_i32_0 : i32, i32
  }
  func.func @transform_3(%arg0: i32, %arg1: i32) -> (i32, i32) {
    %c0_i32 = arith.constant 0 : i32
    %c0_i32_0 = arith.constant 0 : i32
    %c0_i32_1 = arith.constant 0 : i32
    return %c0_i32, %c0_i32_0 : i32, i32
  }
  func.func @transform_4(%arg0: i32, %arg1: i32) -> (i32, i32) {
    %c0_i32 = arith.constant 0 : i32
    %c0_i32_0 = arith.constant 0 : i32
    %c0_i32_1 = arith.constant 0 : i32
    return %c0_i32, %c0_i32_0 : i32, i32
  }
  func.func @transform_5(%arg0: i32, %arg1: i32) -> (i32, i32) {
    %c0_i32 = arith.constant 0 : i32
    %c0_i32_0 = arith.constant 0 : i32
    %c0_i32_1 = arith.constant 0 : i32
    return %c0_i32, %c0_i32_0 : i32, i32
  }
  func.func @transform_6(%arg0: i32, %arg1: i32) -> (i32, i32) {
    %c0_i32 = arith.constant 0 : i32
    %c0_i32_0 = arith.constant 0 : i32
    return %arg0, %c0_i32 : i32, i32
  }
}

module attributes {stable_mosaic.version = 11 : i64} {
  func.func @_spmm_kernel(%arg0: i32, %arg1: i32, %arg2: memref<128x256xbf16, #tpu.memory_space<vmem>>, %arg3: memref<256x128xbf16, #tpu.memory_space<vmem>>, %arg4: memref<128x128xbf16, #tpu.memory_space<vmem>>, %arg5: memref<1x128xf32, #tpu.memory_space<vmem>>, %arg6: memref<128x128xbf16, #tpu.memory_space<vmem>>, %arg7: memref<128x128xf32, #tpu.memory_space<vmem>>) attributes {dimension_semantics = [#tpu.dimension_semantics<parallel>, #tpu.dimension_semantics<arbitrary>], iteration_bounds = array<i64: 2, 1>, scalar_prefetch = 0 : i64, scratch_operands = 1 : i64, tpu.core_type = #tpu.core_type<tc>, window_params = [{transform_indices = @transform_0, window_bounds = array<i64: 128, 256>}, {pipeline_mode = #tpu.pipeline_mode<synchronous>, transform_indices = @transform_1, window_bounds = array<i64: 256, 128>}, {pipeline_mode = #tpu.pipeline_mode<synchronous>, transform_indices = @transform_2, window_bounds = array<i64: 128, 128>}, {pipeline_mode = #tpu.pipeline_mode<synchronous>, transform_indices = @transform_3, window_bounds = array<i64: 1, 128>}, {transform_indices = @transform_4, window_bounds = array<i64: 128, 128>}]} {
    %c0_i32 = arith.constant 0 : i32
    %0 = arith.cmpi eq, %arg1, %c0_i32 : i32
    %1 = arith.extui %0 : i1 to i32
    %c0_i32_0 = arith.constant 0 : i32
    %2 = arith.cmpi ne, %1, %c0_i32_0 : i32
    scf.if %2 {
      %cst_9 = arith.constant 0.000000e+00 : f32
      %15 = vector.broadcast %cst_9 : f32 to vector<128x128xf32>
      %c0_10 = arith.constant 0 : index
      %c0_11 = arith.constant 0 : index
      %16 = vector.load %arg7[%c0_10, %c0_11] : memref<128x128xf32, #tpu.memory_space<vmem>>, vector<128x128xf32>
      tpu.vector_store %arg7[%c0_10, %c0_11], %15 {strides = array<i32>} : memref<128x128xf32, #tpu.memory_space<vmem>>, vector<128x128xf32>,
    } else {
    }
    %c256_i32 = arith.constant 256 : i32
    %3 = arith.muli %arg1, %c256_i32 : i32
    %4 = tpu.assume_multiple %3, 128 : i32
    %5 = arith.index_cast %4 : i32 to index
    %c0 = arith.constant 0 : index
    %6 = vector.load %arg3[%5, %c0] : memref<256x128xbf16, #tpu.memory_space<vmem>>, vector<256x128xbf16>
    %c0_1 = arith.constant 0 : index
    %c0_2 = arith.constant 0 : index
    %7 = vector.load %arg7[%c0_1, %c0_2] : memref<128x128xf32, #tpu.memory_space<vmem>>, vector<128x128xf32>
    %c0_3 = arith.constant 0 : index
    %c0_4 = arith.constant 0 : index
    %8 = vector.load %arg2[%c0_3, %c0_4] : memref<128x256xbf16, #tpu.memory_space<vmem>>, vector<128x256xbf16>
    %cst = arith.constant dense<0.000000e+00> : vector<128x128xf32>
    %9 = tpu.matmul %8, %6, %cst {dimension_numbers = #tpu.dot_dimension_numbers<[1], [0], [0], [1], [0, 0, 1, 1], [], []>} : vector<128x256xbf16>, vector<256x128xbf16>, vector<128x128xf32> -> vector<128x128xf32>
    %10 = arith.addf %7, %9 : vector<128x128xf32>
    %c0_5 = arith.constant 0 : index
    %c0_6 = arith.constant 0 : index
    %11 = vector.load %arg7[%c0_5, %c0_6] : memref<128x128xf32, #tpu.memory_space<vmem>>, vector<128x128xf32>
    tpu.vector_store %arg7[%c0_5, %c0_6], %10 {strides = array<i32>} : memref<128x128xf32, #tpu.memory_space<vmem>>, vector<128x128xf32>,
    %c0_i32_7 = arith.constant 0 : i32
    %12 = arith.cmpi eq, %arg1, %c0_i32_7 : i32
    %13 = arith.extui %12 : i1 to i32
    %c0_i32_8 = arith.constant 0 : i32
    %14 = arith.cmpi ne, %13, %c0_i32_8 : i32
    scf.if %14 {
      %c0_9 = arith.constant 0 : index
      %c0_10 = arith.constant 0 : index
      %15 = vector.load %arg7[%c0_9, %c0_10] : memref<128x128xf32, #tpu.memory_space<vmem>>, vector<128x128xf32>
      %16 = arith.truncf %15 : vector<128x128xf32> to vector<128x128xbf16>
      %c0_11 = arith.constant 0 : index
      %c0_12 = arith.constant 0 : index
      %17 = vector.load %arg4[%c0_11, %c0_12] : memref<128x128xbf16, #tpu.memory_space<vmem>>, vector<128x128xbf16>
      %cst_13 = arith.constant dense<0.000000e+00> : vector<128x128xf32>
      %18 = tpu.matmul %16, %17, %cst_13 {dimension_numbers = #tpu.dot_dimension_numbers<[1], [0], [0], [1], [0, 0, 1, 1], [], []>} : vector<128x128xbf16>, vector<128x128xbf16>, vector<128x128xf32> -> vector<128x128xf32>
      %c0_14 = arith.constant 0 : index
      %c0_15 = arith.constant 0 : index
      %19 = vector.load %arg5[%c0_14, %c0_15] : memref<1x128xf32, #tpu.memory_space<vmem>>, vector<1x128xf32>
      %20 = vector.broadcast %19 : vector<1x128xf32> to vector<128x128xf32>
      %21 = arith.addf %18, %20 : vector<128x128xf32>
      %cst_16 = arith.constant 0.000000e+00 : f32
      %22 = vector.broadcast %cst_16 : f32 to vector<128x128xf32>
      %23 = arith.maximumf %21, %22 : vector<128x128xf32>
      %24 = arith.truncf %23 : vector<128x128xf32> to vector<128x128xbf16>
      %c0_17 = arith.constant 0 : index
      %c0_18 = arith.constant 0 : index
      %25 = vector.load %arg6[%c0_17, %c0_18] : memref<128x128xbf16, #tpu.memory_space<vmem>>, vector<128x128xbf16>
      tpu.vector_store %arg6[%c0_17, %c0_18], %24 {strides = array<i32>} : memref<128x128xbf16, #tpu.memory_space<vmem>>, vector<128x128xbf16>,
    } else {
    }
    return
  }
  func.func @transform_0(%arg0: i32, %arg1: i32) -> (i32, i32) {
    %c0_i32 = arith.constant 0 : i32
    return %arg0, %arg1 : i32, i32
  }
  func.func @transform_1(%arg0: i32, %arg1: i32) -> (i32, i32) {
    %c0_i32 = arith.constant 0 : i32
    %c0_i32_0 = arith.constant 0 : i32
    %c0_i32_1 = arith.constant 0 : i32
    return %c0_i32, %c0_i32_0 : i32, i32
  }
  func.func @transform_2(%arg0: i32, %arg1: i32) -> (i32, i32) {
    %c0_i32 = arith.constant 0 : i32
    %c0_i32_0 = arith.constant 0 : i32
    %c0_i32_1 = arith.constant 0 : i32
    return %c0_i32, %c0_i32_0 : i32, i32
  }
  func.func @transform_3(%arg0: i32, %arg1: i32) -> (i32, i32) {
    %c0_i32 = arith.constant 0 : i32
    %c0_i32_0 = arith.constant 0 : i32
    %c0_i32_1 = arith.constant 0 : i32
    return %c0_i32, %c0_i32_0 : i32, i32
  }
  func.func @transform_4(%arg0: i32, %arg1: i32) -> (i32, i32) {
    %c0_i32 = arith.constant 0 : i32
    %c0_i32_0 = arith.constant 0 : i32
    return %arg0, %c0_i32 : i32, i32
  }
}

</mosaic_0001>

<bundles_post_ra>
// kernel: graphgd_forward.2
= control target key start
LH: loop header
LB: loop body
LE: loop exit
PB: predicated region body
PF: predicated region fallthrough
CT: control target
= control target key end

     0   :  { %s1357_s15 = smov 0   ;;  %s1359_s16 = smov 0   ;;  %s1497_s0 = inlined_call_operand.vmem [shape: bf16[256,256], index: 0, kind: input, shape index: {}]   ;;  %s1498_s1 = inlined_call_operand.vmem [shape: bf16[256,128], index: 1, kind: input, shape index: {}]   ;;  %s1499_s2 = inlined_call_operand.vmem [shape: bf16[128,128], index: 2, kind: input, shape index: {}]   ;;  %s1500_s3 = inlined_call_operand.vmem [shape: f32[1,128], index: 3, kind: input, shape index: {}]   ;;  %s1501_s4 = inlined_call_operand.vmem [shape: bf16[256,128], index: 4, kind: output, shape index: {}]  }
   0x1   :  { %s1361_s17 = smov 0  }
   0x2 LB: > { %s26_s18 = sadd.s32 1, %s1326_s16  ;;  %p995_p0 = scmp.ge.s32.totalorder %s1330_s17, 1  ;;  %s1330_s17 = sphi %s1361_s17, %s14_s17   ;;  %s1326_s16 = sphi %s1359_s16, %s1503_s16   ;;  %s1322_s15 = sphi %s1357_s15, %s1502_s15  }
   0x3   : > { %p28_p1 = scmp.ge.s32.totalorder %s26_s18, 2  ;;  %p183_p2 = scmp.lt.s32.totalorder %s1330_s17, 3 }
   0x5   : > { %s1505_s18 = smov (%p28_p1, %s26_s18), 0  ;;  %p184_p3 = pnand %p995_p0, %p183_p2 }
   0x6   : > { %s996_s21 = sshll.u32 (!%p184_p3), %s1322_s15, 4 }
   0x7   : > { %187 = sbr.rel (%p184_p3) target bundleno = 510 (0x1fe), region = 36  ;;  %p216_p4 = scmp.lt.s32.totalorder (!%p184_p3), %s996_s21, 31 }
   0xc   : > { %v1260_v0 = vld [vmem:[%s1498_s1 + $0x78] sm:$0xff]   ;;  %v1262_v2 = vld [vmem:[%s1498_s1 + $0x70] sm:$0xff]   ;;  %v1264_v4 = vld [vmem:[%s1498_s1 + $0x68] sm:$0xff]   ;;  %s1507_s21 = smov (!%p216_p4, %s996_s21), 31 }
   0xd   : > { %v1261_v1 = vld [vmem:[%s1498_s1 + $0x38] sm:$0xff]   ;;  %1124 = vmatprep.subr.bf16.mxu0 %v1260_v0  ;;  %v1263_v3 = vld [vmem:[%s1498_s1 + $0x30] sm:$0xff]   ;;  %v1265_v5 = vld [vmem:[%s1498_s1 + $0x28] sm:$0xff]   ;;  %s1060_s10 = sshll.u32 %s1507_s21, 3  ;;  %s1000_s30 = sshll.u32 %s1507_s21, 2 }
   0xe   : > { %1125 = vmatpush3.bf16.msra.mxu0 %v1261_v1  ;;  %v1266_v6 = vld [vmem:[%s1498_s1 + $0x60] sm:$0xff]   ;;  %v1268_v8 = vld [vmem:[%s1498_s1 + $0x58] sm:$0xff]   ;;  %s1408_s15 = scalar_lea.vmem %s1497_s0, %s1060_s10  ;;  %v1270_v10 = vld [vmem:[%s1498_s1 + $0x50] sm:$0xff]   ;;  %s1478_s7 = scalar_lea.vmem %s1501_s4, %s1000_s30 }
   0xf   : > { %1126 = vmatprep.subr.bf16.mxu0 %v1262_v2  ;;  %v1267_v7 = vld [vmem:[%s1498_s1 + $0x20] sm:$0xff]   ;;  %v1269_v9 = vld [vmem:[%s1498_s1 + $0x18] sm:$0xff]   ;;  %v1271_v12 = vld [vmem:[%s1498_s1 + $0x10] sm:$0xff]  }
  0x10   : > { %v1278_v11 = vld [vmem:[%s1408_s15 + $0x4] ss:$8 sps:$4 sm:$0xff]   ;;  %v1300_v17 = vld [vmem:[%s1499_s2 + $0x38] sm:$0xff]   ;;  %v1276_v18 = vld [vmem:[%s1408_s15] ss:$8 sps:$4 sm:$0xff]  }
  0x11   : > { %530 = vmatprep.mubr.bf16.mxu0 %v1278_v11  ;;  %v1272_v13 = vld [vmem:[%s1498_s1 + $0x48] sm:$0xff]   ;;  %v1274_v15 = vld [vmem:[%s1498_s1 + $0x40] sm:$0xff]   ;;  %v1301_v19 = vld [vmem:[%s1499_s2 + $0x30] sm:$0xff]   ;;  %1204 = vmatprep.subr.bf16.mxu1 %v1300_v17 }
  0x12   : > { %1127 = vmatpush3.bf16.msra.mxu0 %v1263_v3  ;;  %v1273_v14 = vld [vmem:[%s1498_s1 + $0x8] sm:$0xff]   ;;  %v1275_v16 = vld [vmem:[%s1498_s1] sm:$0xff]   ;;  %v1279_v20 = vld [vmem:[%s1408_s15 + $0x14] ss:$8 sps:$4 sm:$0xff]   ;;  %1205 = vmatpush3.bf16.msra.mxu1 %v1300_v17 }
  0x13   : > { %1128 = vmatprep.subr.bf16.mxu0 %v1264_v4  ;;  %v1302_v21 = vld [vmem:[%s1499_s2 + $0x28] sm:$0xff]   ;;  %1206 = vmatprep.subr.bf16.mxu1 %v1301_v19  ;;  %v1303_v22 = vld [vmem:[%s1499_s2 + $0x20] sm:$0xff]   ;;  %v1281_v23 = vld [vmem:[%s1408_s15 + $0x10] ss:$8 sps:$4 sm:$0xff]  }
  0x14   : > { %v1282_v24 = vld [vmem:[%s1408_s15 + $0x24] ss:$8 sps:$4 sm:$0xff]   ;;  %v1284_v25 = vld [vmem:[%s1408_s15 + $0x20] ss:$8 sps:$4 sm:$0xff]   ;;  %v1285_v26 = vld [vmem:[%s1408_s15 + $0x34] ss:$8 sps:$4 sm:$0xff]  }
  0x15   : > { %v1287_v27 = vld [vmem:[%s1408_s15 + $0x30] ss:$8 sps:$4 sm:$0xff]   ;;  %v1288_v28 = vld [vmem:[%s1408_s15 + $0x44] ss:$8 sps:$4 sm:$0xff]   ;;  %v1290_v29 = vld [vmem:[%s1408_s15 + $0x40] ss:$8 sps:$4 sm:$0xff]  }
  0x16   : > { %1129 = vmatpush3.bf16.msra.mxu0 %v1265_v5  ;;  %1207 = vmatpush3.bf16.msra.mxu1 %v1301_v19  ;;  %v1291_v30 = vld [vmem:[%s1408_s15 + $0x54] ss:$8 sps:$4 sm:$0xff]   ;;  %v1293_v31 = vld [vmem:[%s1408_s15 + $0x50] ss:$8 sps:$4 sm:$0xff]   ;;  %v1294_v32 = vld [vmem:[%s1408_s15 + $0x64] ss:$8 sps:$4 sm:$0xff]  }
  0x17   : > { %1130 = vmatprep.subr.bf16.mxu0 %v1266_v6  ;;  %1208 = vmatprep.subr.bf16.mxu1 %v1302_v21  ;;  %v1296_v33 = vld [vmem:[%s1408_s15 + $0x60] ss:$8 sps:$4 sm:$0xff]   ;;  %v1297_v34 = vld [vmem:[%s1408_s15 + $0x74] ss:$8 sps:$4 sm:$0xff]   ;;  %v1299_v35 = vld [vmem:[%s1408_s15 + $0x70] ss:$8 sps:$4 sm:$0xff]  }
  0x18   : > { %v1304_v36 = vld [vmem:[%s1499_s2 + $0x18] sm:$0xff]   ;;  %v1305_v37 = vld [vmem:[%s1499_s2 + $0x10] sm:$0xff]   ;;  %v1306_v38 = vld [vmem:[%s1499_s2 + $0x8] sm:$0xff]  }
  0x19   : > { %v1307_v39 = vld [vmem:[%s1499_s2] sm:$0xff]  }
  0x1a   : > { %1131 = vmatpush3.bf16.msra.mxu0 %v1267_v7  ;;  %1209 = vmatpush3.bf16.msra.mxu1 %v1302_v21 }
  0x1b   : > { %1132 = vmatprep.subr.bf16.mxu0 %v1268_v8  ;;  %1210 = vmatprep.subr.bf16.mxu1 %v1303_v22 }
  0x1e   : > { %1133 = vmatpush3.bf16.msra.mxu0 %v1269_v9  ;;  %1211 = vmatpush3.bf16.msra.mxu1 %v1303_v22 }
  0x1f   : > { %1134 = vmatprep.subr.bf16.mxu0 %v1270_v10  ;;  %1212 = vmatprep.subr.bf16.mxu1 %v1304_v36 }
  0x22   : > { %1135 = vmatpush3.bf16.msra.mxu0 %v1271_v12  ;;  %1213 = vmatpush3.bf16.msra.mxu1 %v1304_v36 }
  0x23   : > { %1136 = vmatprep.subr.bf16.mxu0 %v1272_v13  ;;  %1214 = vmatprep.subr.bf16.mxu1 %v1305_v37 }
  0x26   : > { %1137 = vmatpush3.bf16.msra.mxu0 %v1273_v14  ;;  %1215 = vmatpush3.bf16.msra.mxu1 %v1305_v37 }
  0x27   : > { %1138 = vmatprep.subr.bf16.mxu0 %v1274_v15  ;;  %1216 = vmatprep.subr.bf16.mxu1 %v1306_v38 }
  0x2a   : > { %1139 = vmatpush3.bf16.msra.mxu0 %v1275_v16  ;;  %1217 = vmatpush3.bf16.msra.mxu1 %v1306_v38 }
  0x2b   : > { %1218 = vmatprep.subr.bf16.mxu1 %v1307_v39 }
  0x2d   : > { %531 = vmatmul.mubr.bf16.vlgmr.msra.gmra.mxu0 %v1276_v18 }
  0x2e   : > { %538 = vmatprep.mubr.bf16.mxu0 %v1279_v20  ;;  %1219 = vmatpush3.bf16.msra.mxu1 %v1307_v39 }
  0x35   : > { %539 = vmatmul.mubr.bf16.gmra.mxu0 %v1281_v23 }
  0x36   : > { %546 = vmatprep.mubr.bf16.mxu0 %v1282_v24 }
  0x3d   : > { %547 = vmatmul.mubr.bf16.gmra.mxu0 %v1284_v25 }
  0x3e   : > { %554 = vmatprep.mubr.bf16.mxu0 %v1285_v26 }
  0x45   : > { %555 = vmatmul.mubr.bf16.gmra.mxu0 %v1287_v27 }
  0x46   : > { %562 = vmatprep.mubr.bf16.mxu0 %v1288_v28 }
  0x4d   : > { %563 = vmatmul.mubr.bf16.gmra.mxu0 %v1290_v29 }
  0x4e   : > { %570 = vmatprep.mubr.bf16.mxu0 %v1291_v30 }
  0x55   : > { %571 = vmatmul.mubr.bf16.gmra.mxu0 %v1293_v31 }
  0x56   : > { %578 = vmatprep.mubr.bf16.mxu0 %v1294_v32 }
  0x5d   : > { %579 = vmatmul.mubr.bf16.gmra.mxu0 %v1296_v33  ;;  %v1033_v33 = vld [vmem:[%s1500_s3] ss:$0 sm:$0xff] }
  0x5e   : > { %586 = vmatprep.mubr.bf16.mxu0 %v1297_v34 }
  0x65   : > { %587 = vmatmul.mubr.bf16.gmra.mxu0 %v1299_v35 }
  0xed   : > { %v1140_v40 = vpop.f32.mrf.mxu0 }
  0xef   : > { %v1141_v41 = vpop.f32.mrf.mxu0 }
  0xf0   : > { %v1142_v44 = vadd.f32 %v1141_v41, %v1140_v40 }
  0xf1   : > { %v1143_v42 = vpop.f32.mrf.mxu0 }
  0xf3   : > { %v1144_v43 = vpop.f32.mrf.mxu0 }
  0xf4   : > { %v1145_v45 = vadd.f32 %v1144_v43, %v1143_v42 }
  0xf5   : > { %v1146_v46 = vpop.f32.mrf.mxu0 }
  0xf6   : > { %v646_v47 = vpack.c.bf16 %v1145_v45, %v1142_v44 }
  0xf7   : > { %v1147_v48 = vpop.f32.mrf.mxu0 }
  0xf8   : > { %1220 = vmatprep.mubr.bf16.mxu1 %v646_v47  ;;  %v1148_v51 = vadd.f32 %v1147_v48, %v1146_v46 }
  0xf9   : > { %v1149_v49 = vpop.f32.mrf.mxu0 }
  0xfb   : > { %v1150_v50 = vpop.f32.mrf.mxu0 }
  0xfc   : > { %v1151_v52 = vadd.f32 %v1150_v50, %v1149_v49 }
  0xfd   : > { %v1152_v53 = vpop.f32.mrf.mxu0 }
  0xfe   : > { %v647_v54 = vpack.c.bf16 %v1151_v52, %v1148_v51 }
  0xff   : > { %v1153_v55 = vpop.f32.mrf.mxu0 }
 0x100   : > { %1221 = vmatmul.mubr.bf16.vlgmr.msra.gmra.mxu1 %v647_v54  ;;  %v1154_v58 = vadd.f32 %v1153_v55, %v1152_v53 }
 0x101   : > { %v1155_v56 = vpop.f32.mrf.mxu0 }
 0x103   : > { %v1156_v57 = vpop.f32.mrf.mxu0 }
 0x104   : > { %v1157_v59 = vadd.f32 %v1156_v57, %v1155_v56 }
 0x105   : > { %v1158_v60 = vpop.f32.mrf.mxu0 }
 0x106   : > { %v648_v61 = vpack.c.bf16 %v1157_v59, %v1154_v58 }
 0x107   : > { %v1159_v62 = vpop.f32.mrf.mxu0 }
 0x108   : > { %1224 = vmatprep.mubr.bf16.mxu1 %v648_v61  ;;  %v1160_v1 = vadd.f32 %v1159_v62, %v1158_v60 }
 0x109   : > { %v1161_v63 = vpop.f32.mrf.mxu0 }
 0x10b   : > { %v1162_v0 = vpop.f32.mrf.mxu0 }
 0x10c   : > { %v1163_v2 = vadd.f32 %v1162_v0, %v1161_v63 }
 0x10d   : > { %v1164_v3 = vpop.f32.mrf.mxu0 }
 0x10e   : > { %v649_v4 = vpack.c.bf16 %v1163_v2, %v1160_v1 }
 0x10f   : > { %v1165_v5 = vpop.f32.mrf.mxu0 }
 0x110   : > { %1225 = vmatmul.mubr.bf16.gmra.mxu1 %v649_v4  ;;  %v1166_v8 = vadd.f32 %v1165_v5, %v1164_v3 }
 0x111   : > { %v1167_v6 = vpop.f32.mrf.mxu0 }
 0x113   : > { %v1168_v7 = vpop.f32.mrf.mxu0 }
 0x114   : > { %v1169_v9 = vadd.f32 %v1168_v7, %v1167_v6 }
 0x115   : > { %v1170_v10 = vpop.f32.mrf.mxu0 }
 0x116   : > { %v650_v11 = vpack.c.bf16 %v1169_v9, %v1166_v8 }
 0x117   : > { %v1171_v12 = vpop.f32.mrf.mxu0 }
 0x118   : > { %1228 = vmatprep.mubr.bf16.mxu1 %v650_v11  ;;  %v1172_v15 = vadd.f32 %v1171_v12, %v1170_v10 }
 0x119   : > { %v1173_v13 = vpop.f32.mrf.mxu0 }
 0x11b   : > { %v1174_v14 = vpop.f32.mrf.mxu0 }
 0x11c   : > { %v1175_v16 = vadd.f32 %v1174_v14, %v1173_v13 }
 0x11d   : > { %v1176_v17 = vpop.f32.mrf.mxu0 }
 0x11e   : > { %v651_v18 = vpack.c.bf16 %v1175_v16, %v1172_v15 }
 0x11f   : > { %v1177_v19 = vpop.f32.mrf.mxu0 }
 0x120   : > { %1229 = vmatmul.mubr.bf16.gmra.mxu1 %v651_v18  ;;  %v1178_v22 = vadd.f32 %v1177_v19, %v1176_v17 }
 0x121   : > { %v1179_v20 = vpop.f32.mrf.mxu0 }
 0x123   : > { %v1180_v21 = vpop.f32.mrf.mxu0 }
 0x124   : > { %v1181_v23 = vadd.f32 %v1180_v21, %v1179_v20 }
 0x125   : > { %v1182_v24 = vpop.f32.mrf.mxu0 }
 0x126   : > { %v652_v25 = vpack.c.bf16 %v1181_v23, %v1178_v22 }
 0x127   : > { %v1183_v26 = vpop.f32.mrf.mxu0 }
 0x128   : > { %1232 = vmatprep.mubr.bf16.mxu1 %v652_v25  ;;  %v1184_v29 = vadd.f32 %v1183_v26, %v1182_v24 }
 0x129   : > { %v1185_v27 = vpop.f32.mrf.mxu0 }
 0x12b   : > { %v1186_v28 = vpop.f32.mrf.mxu0 }
 0x12c   : > { %v1187_v30 = vadd.f32 %v1186_v28, %v1185_v27 }
 0x12e   : > { %v653_v31 = vpack.c.bf16 %v1187_v30, %v1184_v29 }
 0x130   : > { %1233 = vmatmul.mubr.bf16.gmra.mxu1 %v653_v31 }
 0x1c0   : > { %v1222_v32 = vpop.f32.mrf.mxu1 }
 0x1c1   : > { %v768_v35 = vadd.f32 %v1222_v32, %v1033_v33 }
 0x1c2   : > { %v759_v34 = vpop.f32.mrf.mxu1 }
 0x1c3   : > { %v760_v37 = vadd.f32 %v1033_v33, %v759_v34  ;;  %v824_v40 = vmax.f32 %v768_v35, 0.0 }
 0x1c4   : > { %v1223_v36 = vpop.f32.mrf.mxu1 }
 0x1c5   : > { %v771_v38 = vadd.f32 %v1223_v36, %v1033_v33  ;;  %v822_v43 = vmax.f32 %v760_v37, 0.0 }
 0x1c6   : > { %v762_v39 = vpop.f32.mrf.mxu1 }
 0x1c7   : > { %v825_v41 = vmax.f32 %v771_v38, 0.0  ;;  %v763_v42 = vadd.f32 %v1033_v33, %v762_v39 }
 0x1c9   : > { %v1085_v44 = vpack.c.bf16 %v825_v41, %v824_v40  ;;  %v823_v45 = vmax.f32 %v763_v42, 0.0 }
 0x1cb   : > { %1117 = vst [vmem:[%s1478_s7 + $0x8] sm:$0xff] %v1085_v44   ;;  %v1080_v46 = vpack.c.bf16 %v823_v45, %v822_v43 }
 0x1cd   : > { %1081 = vst [vmem:[%s1478_s7] sm:$0xff] %v1080_v46  }
 0x1d0   : > { %v1226_v47 = vpop.f32.mrf.mxu1 }
 0x1d1   : > { %v784_v49 = vadd.f32 %v1226_v47, %v1033_v33 }
 0x1d2   : > { %v775_v48 = vpop.f32.mrf.mxu1 }
 0x1d3   : > { %v776_v51 = vadd.f32 %v1033_v33, %v775_v48  ;;  %v828_v54 = vmax.f32 %v784_v49, 0.0 }
 0x1d4   : > { %v1227_v50 = vpop.f32.mrf.mxu1 }
 0x1d5   : > { %v787_v52 = vadd.f32 %v1227_v50, %v1033_v33  ;;  %v826_v57 = vmax.f32 %v776_v51, 0.0 }
 0x1d6   : > { %v778_v53 = vpop.f32.mrf.mxu1 }
 0x1d7   : > { %v829_v55 = vmax.f32 %v787_v52, 0.0  ;;  %v779_v56 = vadd.f32 %v1033_v33, %v778_v53 }
 0x1d9   : > { %v1095_v58 = vpack.c.bf16 %v829_v55, %v828_v54  ;;  %v827_v59 = vmax.f32 %v779_v56, 0.0 }
 0x1db   : > { %1119 = vst [vmem:[%s1478_s7 + $0x18] sm:$0xff] %v1095_v58   ;;  %v1090_v60 = vpack.c.bf16 %v827_v59, %v826_v57 }
 0x1dd   : > { %1118 = vst [vmem:[%s1478_s7 + $0x10] sm:$0xff] %v1090_v60  }
 0x1e0   : > { %v1230_v61 = vpop.f32.mrf.mxu1 }
 0x1e1   : > { %v800_v63 = vadd.f32 %v1230_v61, %v1033_v33 }
 0x1e2   : > { %v791_v62 = vpop.f32.mrf.mxu1 }
 0x1e3   : > { %v792_v1 = vadd.f32 %v1033_v33, %v791_v62  ;;  %v832_v4 = vmax.f32 %v800_v63, 0.0 }
 0x1e4   : > { %v1231_v0 = vpop.f32.mrf.mxu1 }
 0x1e5   : > { %v803_v2 = vadd.f32 %v1231_v0, %v1033_v33  ;;  %v830_v7 = vmax.f32 %v792_v1, 0.0 }
 0x1e6   : > { %v794_v3 = vpop.f32.mrf.mxu1 }
 0x1e7   : > { %v833_v5 = vmax.f32 %v803_v2, 0.0  ;;  %v795_v6 = vadd.f32 %v1033_v33, %v794_v3 }
 0x1e9   : > { %v1105_v8 = vpack.c.bf16 %v833_v5, %v832_v4  ;;  %v831_v9 = vmax.f32 %v795_v6, 0.0 }
 0x1eb   : > { %1121 = vst [vmem:[%s1478_s7 + $0x28] sm:$0xff] %v1105_v8   ;;  %v1100_v10 = vpack.c.bf16 %v831_v9, %v830_v7 }
 0x1ed   : > { %1120 = vst [vmem:[%s1478_s7 + $0x20] sm:$0xff] %v1100_v10  }
 0x1f0   : > { %v1234_v11 = vpop.f32.mrf.mxu1 }
 0x1f1   : > { %v816_v13 = vadd.f32 %v1234_v11, %v1033_v33 }
 0x1f2   : > { %v807_v12 = vpop.f32.mrf.mxu1 }
 0x1f3   : > { %v808_v15 = vadd.f32 %v1033_v33, %v807_v12  ;;  %v836_v18 = vmax.f32 %v816_v13, 0.0 }
 0x1f4   : > { %v1235_v14 = vpop.f32.mrf.mxu1 }
 0x1f5   : > { %v819_v16 = vadd.f32 %v1235_v14, %v1033_v33  ;;  %v834_v21 = vmax.f32 %v808_v15, 0.0 }
 0x1f6   : > { %v810_v17 = vpop.f32.mrf.mxu1 }
 0x1f7   : > { %v837_v19 = vmax.f32 %v819_v16, 0.0  ;;  %v811_v20 = vadd.f32 %v1033_v33, %v810_v17 }
 0x1f9   : > { %v1115_v22 = vpack.c.bf16 %v837_v19, %v836_v18  ;;  %v835_v23 = vmax.f32 %v811_v20, 0.0 }
 0x1fb   : > { %1123 = vst [vmem:[%s1478_s7 + $0x38] sm:$0xff] %v1115_v22   ;;  %v1110_v24 = vpack.c.bf16 %v835_v23, %v834_v21 }
 0x1fd   : > { %1122 = vst [vmem:[%s1478_s7 + $0x30] sm:$0xff] %v1110_v24  }
 0x1fe PF: > { %s14_s17 = sadd.s32 1, %s1330_s17   ;;  %s1502_s15 = smov %s1326_s16 }
 0x1ff   : > { %p11_p5 = scmp.ge.s32.totalorder %s14_s17, 4   ;;  %s1503_s16 = smov %s1505_s18 }
 0x201   :  { %13 = sbr.rel (!%p11_p5) target bundleno = 2 (0x2), region = 75 }

// kernel: graphgd_forward.3
= control target key start
LH: loop header
LB: loop body
LE: loop exit
PB: predicated region body
PF: predicated region fallthrough
CT: control target
= control target key end

     0   :  { %s1662_s21 = smov 0   ;;  %s1664_s22 = smov 0   ;;  %s1829_s0 = inlined_call_operand.vmem [shape: bf16[256,256], index: 0, kind: input, shape index: {}]   ;;  %s1830_s1 = inlined_call_operand.vmem [shape: bf16[256,128], index: 1, kind: input, shape index: {}]   ;;  %s1831_s2 = inlined_call_operand.vmem [shape: bf16[128,128], index: 2, kind: input, shape index: {}]   ;;  %s1832_s3 = inlined_call_operand.vmem [shape: f32[1,128], index: 3, kind: input, shape index: {}, may-alias: {3,5}]   ;;  %s1833_s4 = inlined_call_operand.vmem [shape: bf16[128,128], index: 4, kind: input, shape index: {}]   ;;  %s1834_s5 = inlined_call_operand.vmem [shape: f32[1,128], index: 5, kind: input, shape index: {}, may-alias: {3,5}]   ;;  %s1835_s6 = inlined_call_operand.vmem [shape: bf16[256,128], index: 6, kind: output, shape index: {}]  }
   0x1   :  { %s1666_s23 = smov 0  }
   0x2 LB: > { %s28_s24 = sadd.s32 1, %s1621_s22  ;;  %p1225_p0 = scmp.ge.s32.totalorder %s1625_s23, 1  ;;  %s1625_s23 = sphi %s1666_s23, %s16_s23   ;;  %s1621_s22 = sphi %s1664_s22, %s1837_s22   ;;  %s1617_s21 = sphi %s1662_s21, %s1836_s21  }
   0x3   : > { %p30_p1 = scmp.ge.s32.totalorder %s28_s24, 2  ;;  %p233_p2 = scmp.lt.s32.totalorder %s1625_s23, 3 }
   0x5   : > { %s1839_s24 = smov (%p30_p1, %s28_s24), 0  ;;  %p234_p3 = pnand %p1225_p0, %p233_p2 }
   0x6   : > { %s1226_s27 = sshll.u32 (!%p234_p3), %s1617_s21, 4 }
   0x7   : > { %237 = sbr.rel (%p234_p3) target bundleno = 714 (0x2ca), region = 44  ;;  %p270_p4 = scmp.lt.s32.totalorder (!%p234_p3), %s1226_s27, 31 }
   0xc   : > { %v1547_v0 = vld [vmem:[%s1830_s1 + $0x78] sm:$0xff]   ;;  %v1549_v2 = vld [vmem:[%s1830_s1 + $0x70] sm:$0xff]   ;;  %v1551_v4 = vld [vmem:[%s1830_s1 + $0x68] sm:$0xff]   ;;  %s1841_s27 = smov (!%p270_p4, %s1226_s27), 31 }
   0xd   : > { %v1548_v1 = vld [vmem:[%s1830_s1 + $0x38] sm:$0xff]   ;;  %1363 = vmatprep.subr.bf16.mxu0 %v1547_v0  ;;  %v1550_v3 = vld [vmem:[%s1830_s1 + $0x30] sm:$0xff]   ;;  %v1552_v5 = vld [vmem:[%s1830_s1 + $0x28] sm:$0xff]   ;;  %s1299_s18 = sshll.u32 %s1841_s27, 3  ;;  %s1230_s14 = sshll.u32 %s1841_s27, 2 }
   0xe   : > { %1364 = vmatpush3.bf16.msra.mxu0 %v1548_v1  ;;  %v1553_v6 = vld [vmem:[%s1830_s1 + $0x60] sm:$0xff]   ;;  %v1555_v8 = vld [vmem:[%s1830_s1 + $0x58] sm:$0xff]   ;;  %s1713_s26 = scalar_lea.vmem %s1829_s0, %s1299_s18  ;;  %v1557_v10 = vld [vmem:[%s1830_s1 + $0x50] sm:$0xff]   ;;  %s1810_s17 = scalar_lea.vmem %s1835_s6, %s1230_s14 }
   0xf   : > { %1365 = vmatprep.subr.bf16.mxu0 %v1549_v2  ;;  %v1554_v7 = vld [vmem:[%s1830_s1 + $0x20] sm:$0xff]   ;;  %v1556_v9 = vld [vmem:[%s1830_s1 + $0x18] sm:$0xff]   ;;  %v1558_v12 = vld [vmem:[%s1830_s1 + $0x10] sm:$0xff]  }
  0x10   : > { %v1565_v11 = vld [vmem:[%s1713_s26 + $0x4] ss:$8 sps:$4 sm:$0xff]   ;;  %v1587_v17 = vld [vmem:[%s1831_s2 + $0x38] sm:$0xff]   ;;  %v1563_v18 = vld [vmem:[%s1713_s26] ss:$8 sps:$4 sm:$0xff]  }
  0x11   : > { %584 = vmatprep.mubr.bf16.mxu0 %v1565_v11  ;;  %v1559_v13 = vld [vmem:[%s1830_s1 + $0x48] sm:$0xff]   ;;  %v1561_v15 = vld [vmem:[%s1830_s1 + $0x40] sm:$0xff]   ;;  %v1588_v19 = vld [vmem:[%s1831_s2 + $0x30] sm:$0xff]   ;;  %1459 = vmatprep.subr.bf16.mxu1 %v1587_v17 }
  0x12   : > { %1366 = vmatpush3.bf16.msra.mxu0 %v1550_v3  ;;  %v1560_v14 = vld [vmem:[%s1830_s1 + $0x8] sm:$0xff]   ;;  %v1562_v16 = vld [vmem:[%s1830_s1] sm:$0xff]   ;;  %v1566_v20 = vld [vmem:[%s1713_s26 + $0x14] ss:$8 sps:$4 sm:$0xff]   ;;  %1460 = vmatpush3.bf16.msra.mxu1 %v1587_v17 }
  0x13   : > { %1367 = vmatprep.subr.bf16.mxu0 %v1551_v4  ;;  %v1589_v21 = vld [vmem:[%s1831_s2 + $0x28] sm:$0xff]   ;;  %1461 = vmatprep.subr.bf16.mxu1 %v1588_v19  ;;  %v1590_v22 = vld [vmem:[%s1831_s2 + $0x20] sm:$0xff]   ;;  %v1568_v23 = vld [vmem:[%s1713_s26 + $0x10] ss:$8 sps:$4 sm:$0xff]  }
  0x14   : > { %v1569_v24 = vld [vmem:[%s1713_s26 + $0x24] ss:$8 sps:$4 sm:$0xff]   ;;  %v1571_v25 = vld [vmem:[%s1713_s26 + $0x20] ss:$8 sps:$4 sm:$0xff]   ;;  %v1572_v26 = vld [vmem:[%s1713_s26 + $0x34] ss:$8 sps:$4 sm:$0xff]  }
  0x15   : > { %v1574_v27 = vld [vmem:[%s1713_s26 + $0x30] ss:$8 sps:$4 sm:$0xff]   ;;  %v1575_v28 = vld [vmem:[%s1713_s26 + $0x44] ss:$8 sps:$4 sm:$0xff]   ;;  %v1577_v29 = vld [vmem:[%s1713_s26 + $0x40] ss:$8 sps:$4 sm:$0xff]  }
  0x16   : > { %1368 = vmatpush3.bf16.msra.mxu0 %v1552_v5  ;;  %1462 = vmatpush3.bf16.msra.mxu1 %v1588_v19  ;;  %v1578_v30 = vld [vmem:[%s1713_s26 + $0x54] ss:$8 sps:$4 sm:$0xff]   ;;  %v1580_v31 = vld [vmem:[%s1713_s26 + $0x50] ss:$8 sps:$4 sm:$0xff]   ;;  %v1581_v32 = vld [vmem:[%s1713_s26 + $0x64] ss:$8 sps:$4 sm:$0xff]  }
  0x17   : > { %1369 = vmatprep.subr.bf16.mxu0 %v1553_v6  ;;  %1463 = vmatprep.subr.bf16.mxu1 %v1589_v21  ;;  %v1583_v33 = vld [vmem:[%s1713_s26 + $0x60] ss:$8 sps:$4 sm:$0xff]   ;;  %v1584_v34 = vld [vmem:[%s1713_s26 + $0x74] ss:$8 sps:$4 sm:$0xff]   ;;  %v1586_v35 = vld [vmem:[%s1713_s26 + $0x70] ss:$8 sps:$4 sm:$0xff]  }
  0x18   : > { %v1591_v36 = vld [vmem:[%s1831_s2 + $0x18] sm:$0xff]   ;;  %v1592_v37 = vld [vmem:[%s1831_s2 + $0x10] sm:$0xff]   ;;  %v1593_v38 = vld [vmem:[%s1831_s2 + $0x8] sm:$0xff]  }
  0x19   : > { %v1594_v39 = vld [vmem:[%s1831_s2] sm:$0xff]   ;;  %v1595_v40 = vld [vmem:[%s1833_s4 + $0x38] sm:$0xff]   ;;  %v1596_v56 = vld [vmem:[%s1833_s4 + $0x30] sm:$0xff]  }
  0x1a   : > { %1370 = vmatpush3.bf16.msra.mxu0 %v1554_v7  ;;  %1464 = vmatpush3.bf16.msra.mxu1 %v1589_v21  ;;  %v1597_v59 = vld [vmem:[%s1833_s4 + $0x28] sm:$0xff]   ;;  %v1598_v1 = vld [vmem:[%s1833_s4 + $0x20] sm:$0xff]   ;;  %v1599_v4 = vld [vmem:[%s1833_s4 + $0x18] sm:$0xff]  }
  0x1b   : > { %1371 = vmatprep.subr.bf16.mxu0 %v1555_v8  ;;  %1465 = vmatprep.subr.bf16.mxu1 %v1590_v22 }
  0x1e   : > { %1372 = vmatpush3.bf16.msra.mxu0 %v1556_v9  ;;  %1466 = vmatpush3.bf16.msra.mxu1 %v1590_v22 }
  0x1f   : > { %1373 = vmatprep.subr.bf16.mxu0 %v1557_v10  ;;  %1467 = vmatprep.subr.bf16.mxu1 %v1591_v36 }
  0x22   : > { %1374 = vmatpush3.bf16.msra.mxu0 %v1558_v12  ;;  %1468 = vmatpush3.bf16.msra.mxu1 %v1591_v36 }
  0x23   : > { %1375 = vmatprep.subr.bf16.mxu0 %v1559_v13  ;;  %1469 = vmatprep.subr.bf16.mxu1 %v1592_v37 }
  0x26   : > { %1376 = vmatpush3.bf16.msra.mxu0 %v1560_v14  ;;  %1470 = vmatpush3.bf16.msra.mxu1 %v1592_v37  ;;  %v1600_v37 = vld [vmem:[%s1833_s4 + $0x10] sm:$0xff]  }
  0x27   : > { %1377 = vmatprep.subr.bf16.mxu0 %v1561_v15  ;;  %1471 = vmatprep.subr.bf16.mxu1 %v1593_v38 }
  0x2a   : > { %1378 = vmatpush3.bf16.msra.mxu0 %v1562_v16  ;;  %1472 = vmatpush3.bf16.msra.mxu1 %v1593_v38  ;;  %v1601_v38 = vld [vmem:[%s1833_s4 + $0x8] sm:$0xff]  }
  0x2b   : > { %1473 = vmatprep.subr.bf16.mxu1 %v1594_v39 }
  0x2d   : > { %585 = vmatmul.mubr.bf16.vlgmr.msra.gmra.mxu0 %v1563_v18 }
  0x2e   : > { %592 = vmatprep.mubr.bf16.mxu0 %v1566_v20  ;;  %1474 = vmatpush3.bf16.msra.mxu1 %v1594_v39  ;;  %v1602_v39 = vld [vmem:[%s1833_s4] sm:$0xff]  }
  0x2f   : > { %1491 = vmatprep.subr.bf16.mxu1 %v1595_v40 }
  0x35   : > { %593 = vmatmul.mubr.bf16.gmra.mxu0 %v1568_v23 }
  0x36   : > { %600 = vmatprep.mubr.bf16.mxu0 %v1569_v24 }
  0x3d   : > { %601 = vmatmul.mubr.bf16.gmra.mxu0 %v1571_v25 }
  0x3e   : > { %608 = vmatprep.mubr.bf16.mxu0 %v1572_v26 }
  0x45   : > { %609 = vmatmul.mubr.bf16.gmra.mxu0 %v1574_v27 }
  0x46   : > { %616 = vmatprep.mubr.bf16.mxu0 %v1575_v28 }
  0x4d   : > { %617 = vmatmul.mubr.bf16.gmra.mxu0 %v1577_v29 }
  0x4e   : > { %624 = vmatprep.mubr.bf16.mxu0 %v1578_v30 }
  0x55   : > { %625 = vmatmul.mubr.bf16.gmra.mxu0 %v1580_v31 }
  0x56   : > { %632 = vmatprep.mubr.bf16.mxu0 %v1581_v32 }
  0x5d   : > { %633 = vmatmul.mubr.bf16.gmra.mxu0 %v1583_v33 }
  0x5e   : > { %640 = vmatprep.mubr.bf16.mxu0 %v1584_v34 }
  0x65   : > { %641 = vmatmul.mubr.bf16.gmra.mxu0 %v1586_v35 }
  0xed   : > { %v1379_v41 = vpop.f32.mrf.mxu0 }
  0xef   : > { %v1380_v42 = vpop.f32.mrf.mxu0 }
  0xf0   : > { %v1381_v45 = vadd.f32 %v1380_v42, %v1379_v41  ;;  %v1263_v42 = vld [vmem:[%s1832_s3] ss:$0 sm:$0xff] }
  0xf1   : > { %v1382_v43 = vpop.f32.mrf.mxu0 }
  0xf3   : > { %v1383_v44 = vpop.f32.mrf.mxu0 }
  0xf4   : > { %v1384_v46 = vadd.f32 %v1383_v44, %v1382_v43 }
  0xf5   : > { %v1385_v47 = vpop.f32.mrf.mxu0 }
  0xf6   : > { %v700_v48 = vpack.c.bf16 %v1384_v46, %v1381_v45 }
  0xf7   : > { %v1386_v49 = vpop.f32.mrf.mxu0 }
  0xf8   : > { %1475 = vmatprep.mubr.bf16.mxu1 %v700_v48  ;;  %v1387_v52 = vadd.f32 %v1386_v49, %v1385_v47 }
  0xf9   : > { %v1388_v50 = vpop.f32.mrf.mxu0 }
  0xfb   : > { %v1389_v51 = vpop.f32.mrf.mxu0 }
  0xfc   : > { %v1390_v53 = vadd.f32 %v1389_v51, %v1388_v50 }
  0xfd   : > { %v1391_v54 = vpop.f32.mrf.mxu0 }
  0xfe   : > { %v701_v55 = vpack.c.bf16 %v1390_v53, %v1387_v52 }
  0xff   : > { %v1392_v57 = vpop.f32.mrf.mxu0 }
 0x100   : > { %1476 = vmatmul.mubr.bf16.vlgmr.msra.gmra.mxu1 %v701_v55  ;;  %v1393_v61 = vadd.f32 %v1392_v57, %v1391_v54 }
 0x101   : > { %v1394_v58 = vpop.f32.mrf.mxu0  ;;  %1492 = vmatpush3.bf16.msra.mxu1 %v1595_v40 }
 0x102   : > { %1493 = vmatprep.subr.bf16.mxu1 %v1596_v56 }
 0x103   : > { %v1395_v60 = vpop.f32.mrf.mxu0 }
 0x104   : > { %v1396_v62 = vadd.f32 %v1395_v60, %v1394_v58 }
 0x105   : > { %v1397_v63 = vpop.f32.mrf.mxu0  ;;  %1494 = vmatpush3.bf16.msra.mxu1 %v1596_v56 }
 0x106   : > { %v702_v0 = vpack.c.bf16 %v1396_v62, %v1393_v61  ;;  %1495 = vmatprep.subr.bf16.mxu1 %v1597_v59 }
 0x107   : > { %v1398_v2 = vpop.f32.mrf.mxu0 }
 0x108   : > { %1479 = vmatprep.mubr.bf16.mxu1 %v702_v0  ;;  %v1399_v6 = vadd.f32 %v1398_v2, %v1397_v63 }
 0x109   : > { %v1400_v3 = vpop.f32.mrf.mxu0  ;;  %1496 = vmatpush3.bf16.msra.mxu1 %v1597_v59 }
 0x10a   : > { %1497 = vmatprep.subr.bf16.mxu1 %v1598_v1 }
 0x10b   : > { %v1401_v5 = vpop.f32.mrf.mxu0 }
 0x10c   : > { %v1402_v7 = vadd.f32 %v1401_v5, %v1400_v3 }
 0x10d   : > { %v1403_v8 = vpop.f32.mrf.mxu0  ;;  %1498 = vmatpush3.bf16.msra.mxu1 %v1598_v1 }
 0x10e   : > { %v703_v9 = vpack.c.bf16 %v1402_v7, %v1399_v6  ;;  %1499 = vmatprep.subr.bf16.mxu1 %v1599_v4 }
 0x10f   : > { %v1404_v10 = vpop.f32.mrf.mxu0 }
 0x110   : > { %1480 = vmatmul.mubr.bf16.gmra.mxu1 %v703_v9  ;;  %v1405_v13 = vadd.f32 %v1404_v10, %v1403_v8 }
 0x111   : > { %v1406_v11 = vpop.f32.mrf.mxu0  ;;  %1500 = vmatpush3.bf16.msra.mxu1 %v1599_v4 }
 0x112   : > { %1501 = vmatprep.subr.bf16.mxu1 %v1600_v37 }
 0x113   : > { %v1407_v12 = vpop.f32.mrf.mxu0 }
 0x114   : > { %v1408_v14 = vadd.f32 %v1407_v12, %v1406_v11 }
 0x115   : > { %v1409_v15 = vpop.f32.mrf.mxu0  ;;  %1502 = vmatpush3.bf16.msra.mxu1 %v1600_v37 }
 0x116   : > { %v704_v16 = vpack.c.bf16 %v1408_v14, %v1405_v13  ;;  %1503 = vmatprep.subr.bf16.mxu1 %v1601_v38 }
 0x117   : > { %v1410_v17 = vpop.f32.mrf.mxu0 }
 0x118   : > { %1483 = vmatprep.mubr.bf16.mxu1 %v704_v16  ;;  %v1411_v20 = vadd.f32 %v1410_v17, %v1409_v15 }
 0x119   : > { %v1412_v18 = vpop.f32.mrf.mxu0  ;;  %1504 = vmatpush3.bf16.msra.mxu1 %v1601_v38 }
 0x11a   : > { %1505 = vmatprep.subr.bf16.mxu1 %v1602_v39 }
 0x11b   : > { %v1413_v19 = vpop.f32.mrf.mxu0 }
 0x11c   : > { %v1414_v21 = vadd.f32 %v1413_v19, %v1412_v18 }
 0x11d   : > { %v1415_v22 = vpop.f32.mrf.mxu0  ;;  %1506 = vmatpush3.bf16.msra.mxu1 %v1602_v39 }
 0x11e   : > { %v705_v23 = vpack.c.bf16 %v1414_v21, %v1411_v20 }
 0x11f   : > { %v1416_v24 = vpop.f32.mrf.mxu0 }
 0x120   : > { %1484 = vmatmul.mubr.bf16.gmra.mxu1 %v705_v23  ;;  %v1417_v27 = vadd.f32 %v1416_v24, %v1415_v22 }
 0x121   : > { %v1418_v25 = vpop.f32.mrf.mxu0 }
 0x123   : > { %v1419_v26 = vpop.f32.mrf.mxu0 }
 0x124   : > { %v1420_v28 = vadd.f32 %v1419_v26, %v1418_v25 }
 0x125   : > { %v1421_v29 = vpop.f32.mrf.mxu0 }
 0x126   : > { %v706_v30 = vpack.c.bf16 %v1420_v28, %v1417_v27 }
 0x127   : > { %v1422_v31 = vpop.f32.mrf.mxu0 }
 0x128   : > { %1487 = vmatprep.mubr.bf16.mxu1 %v706_v30  ;;  %v1423_v34 = vadd.f32 %v1422_v31, %v1421_v29 }
 0x129   : > { %v1424_v32 = vpop.f32.mrf.mxu0 }
 0x12b   : > { %v1425_v33 = vpop.f32.mrf.mxu0 }
 0x12c   : > { %v1426_v35 = vadd.f32 %v1425_v33, %v1424_v32 }
 0x12e   : > { %v707_v36 = vpack.c.bf16 %v1426_v35, %v1423_v34  ;;  %v1272_v34 = vld [vmem:[%s1834_s5] ss:$0 sm:$0xff] }
 0x130   : > { %1488 = vmatmul.mubr.bf16.gmra.mxu1 %v707_v36 }
 0x1c0   : > { %v1477_v40 = vpop.f32.mrf.mxu1 }
 0x1c1   : > { %v822_v46 = vadd.f32 %v1477_v40, %v1263_v42 }
 0x1c2   : > { %v813_v41 = vpop.f32.mrf.mxu1 }
 0x1c3   : > { %v814_v44 = vadd.f32 %v1263_v42, %v813_v41  ;;  %v878_v52 = vmax.f32 %v822_v46, 0.0 }
 0x1c4   : > { %v1478_v43 = vpop.f32.mrf.mxu1 }
 0x1c5   : > { %v825_v45 = vadd.f32 %v1478_v43, %v1263_v42  ;;  %v876_v50 = vmax.f32 %v814_v44, 0.0 }
 0x1c6   : > { %v816_v47 = vpop.f32.mrf.mxu1 }
 0x1c7   : > { %v817_v48 = vadd.f32 %v1263_v42, %v816_v47  ;;  %v879_v49 = vmax.f32 %v825_v45, 0.0 }
 0x1c9   : > { %v877_v51 = vmax.f32 %v817_v48, 0.0  ;;  %v893_v54 = vpack.c.bf16 %v879_v49, %v878_v52 }
 0x1cb   : > { %v892_v53 = vpack.c.bf16 %v877_v51, %v876_v50 }
 0x1cd   : > { %1507 = vmatprep.mubr.bf16.mxu1 %v892_v53 }
 0x1ce   : > { %1508 = vmatmul.mubr.bf16.vlgmr.msra.gmra.mxu1 %v893_v54 }
 0x1d0   : > { %v1481_v55 = vpop.f32.mrf.mxu1 }
 0x1d1   : > { %v838_v60 = vadd.f32 %v1481_v55, %v1263_v42 }
 0x1d2   : > { %v829_v56 = vpop.f32.mrf.mxu1 }
 0x1d3   : > { %v830_v58 = vadd.f32 %v1263_v42, %v829_v56  ;;  %v882_v2 = vmax.f32 %v838_v60, 0.0 }
 0x1d4   : > { %v1482_v57 = vpop.f32.mrf.mxu1 }
 0x1d5   : > { %v841_v59 = vadd.f32 %v1482_v57, %v1263_v42  ;;  %v880_v0 = vmax.f32 %v830_v58, 0.0 }
 0x1d6   : > { %v832_v61 = vpop.f32.mrf.mxu1 }
 0x1d7   : > { %v833_v62 = vadd.f32 %v1263_v42, %v832_v61  ;;  %v883_v63 = vmax.f32 %v841_v59, 0.0 }
 0x1d9   : > { %v881_v1 = vmax.f32 %v833_v62, 0.0  ;;  %v895_v4 = vpack.c.bf16 %v883_v63, %v882_v2 }
 0x1db   : > { %v894_v3 = vpack.c.bf16 %v881_v1, %v880_v0 }
 0x1dd   : > { %1511 = vmatprep.mubr.bf16.mxu1 %v894_v3 }
 0x1de   : > { %1512 = vmatmul.mubr.bf16.gmra.mxu1 %v895_v4 }
 0x1e0   : > { %v1485_v5 = vpop.f32.mrf.mxu1 }
 0x1e1   : > { %v854_v10 = vadd.f32 %v1485_v5, %v1263_v42 }
 0x1e2   : > { %v845_v6 = vpop.f32.mrf.mxu1 }
 0x1e3   : > { %v846_v8 = vadd.f32 %v1263_v42, %v845_v6  ;;  %v886_v16 = vmax.f32 %v854_v10, 0.0 }
 0x1e4   : > { %v1486_v7 = vpop.f32.mrf.mxu1 }
 0x1e5   : > { %v857_v9 = vadd.f32 %v1486_v7, %v1263_v42  ;;  %v884_v14 = vmax.f32 %v846_v8, 0.0 }
 0x1e6   : > { %v848_v11 = vpop.f32.mrf.mxu1 }
 0x1e7   : > { %v849_v12 = vadd.f32 %v1263_v42, %v848_v11  ;;  %v887_v13 = vmax.f32 %v857_v9, 0.0 }
 0x1e9   : > { %v885_v15 = vmax.f32 %v849_v12, 0.0  ;;  %v897_v18 = vpack.c.bf16 %v887_v13, %v886_v16 }
 0x1eb   : > { %v896_v17 = vpack.c.bf16 %v885_v15, %v884_v14 }
 0x1ed   : > { %1515 = vmatprep.mubr.bf16.mxu1 %v896_v17 }
 0x1ee   : > { %1516 = vmatmul.mubr.bf16.gmra.mxu1 %v897_v18 }
 0x1f0   : > { %v1489_v19 = vpop.f32.mrf.mxu1 }
 0x1f1   : > { %v870_v24 = vadd.f32 %v1489_v19, %v1263_v42 }
 0x1f2   : > { %v861_v20 = vpop.f32.mrf.mxu1 }
 0x1f3   : > { %v862_v22 = vadd.f32 %v1263_v42, %v861_v20  ;;  %v890_v30 = vmax.f32 %v870_v24, 0.0 }
 0x1f4   : > { %v1490_v21 = vpop.f32.mrf.mxu1 }
 0x1f5   : > { %v873_v23 = vadd.f32 %v1490_v21, %v1263_v42  ;;  %v888_v28 = vmax.f32 %v862_v22, 0.0 }
 0x1f6   : > { %v864_v25 = vpop.f32.mrf.mxu1 }
 0x1f7   : > { %v865_v26 = vadd.f32 %v1263_v42, %v864_v25  ;;  %v891_v27 = vmax.f32 %v873_v23, 0.0 }
 0x1f9   : > { %v889_v29 = vmax.f32 %v865_v26, 0.0  ;;  %v899_v32 = vpack.c.bf16 %v891_v27, %v890_v30 }
 0x1fb   : > { %v898_v31 = vpack.c.bf16 %v889_v29, %v888_v28 }
 0x1fd   : > { %1519 = vmatprep.mubr.bf16.mxu1 %v898_v31 }
 0x1fe   : > { %1520 = vmatmul.mubr.bf16.gmra.mxu1 %v899_v32 }
 0x28e   : > { %v1509_v33 = vpop.f32.mrf.mxu1 }
 0x28f   : > { %v1014_v37 = vadd.f32 %v1509_v33, %v1272_v34 }
 0x290   : > { %v1005_v35 = vpop.f32.mrf.mxu1 }
 0x291   : > { %v1006_v40 = vadd.f32 %v1272_v34, %v1005_v35 }
 0x292   : > { %v1510_v36 = vpop.f32.mrf.mxu1 }
 0x293   : > { %v1017_v38 = vadd.f32 %v1510_v36, %v1272_v34 }
 0x294   : > { %v1008_v39 = vpop.f32.mrf.mxu1 }
 0x295   : > { %v1324_v41 = vpack.c.bf16 %v1017_v38, %v1014_v37  ;;  %v1009_v42 = vadd.f32 %v1272_v34, %v1008_v39 }
 0x297   : > { %1356 = vst [vmem:[%s1810_s17 + $0x8] sm:$0xff] %v1324_v41   ;;  %v1319_v43 = vpack.c.bf16 %v1009_v42, %v1006_v40 }
 0x299   : > { %1320 = vst [vmem:[%s1810_s17] sm:$0xff] %v1319_v43  }
 0x29e   : > { %v1513_v44 = vpop.f32.mrf.mxu1 }
 0x29f   : > { %v1030_v47 = vadd.f32 %v1513_v44, %v1272_v34 }
 0x2a0   : > { %v1021_v45 = vpop.f32.mrf.mxu1 }
 0x2a1   : > { %v1022_v50 = vadd.f32 %v1272_v34, %v1021_v45 }
 0x2a2   : > { %v1514_v46 = vpop.f32.mrf.mxu1 }
 0x2a3   : > { %v1033_v48 = vadd.f32 %v1514_v46, %v1272_v34 }
 0x2a4   : > { %v1024_v49 = vpop.f32.mrf.mxu1 }
 0x2a5   : > { %v1334_v51 = vpack.c.bf16 %v1033_v48, %v1030_v47  ;;  %v1025_v52 = vadd.f32 %v1272_v34, %v1024_v49 }
 0x2a7   : > { %1358 = vst [vmem:[%s1810_s17 + $0x18] sm:$0xff] %v1334_v51   ;;  %v1329_v53 = vpack.c.bf16 %v1025_v52, %v1022_v50 }
 0x2a9   : > { %1357 = vst [vmem:[%s1810_s17 + $0x10] sm:$0xff] %v1329_v53  }
 0x2ae   : > { %v1517_v54 = vpop.f32.mrf.mxu1 }
 0x2af   : > { %v1046_v57 = vadd.f32 %v1517_v54, %v1272_v34 }
 0x2b0   : > { %v1037_v55 = vpop.f32.mrf.mxu1 }
 0x2b1   : > { %v1038_v60 = vadd.f32 %v1272_v34, %v1037_v55 }
 0x2b2   : > { %v1518_v56 = vpop.f32.mrf.mxu1 }
 0x2b3   : > { %v1049_v58 = vadd.f32 %v1518_v56, %v1272_v34 }
 0x2b4   : > { %v1040_v59 = vpop.f32.mrf.mxu1 }
 0x2b5   : > { %v1344_v61 = vpack.c.bf16 %v1049_v58, %v1046_v57  ;;  %v1041_v62 = vadd.f32 %v1272_v34, %v1040_v59 }
 0x2b7   : > { %1360 = vst [vmem:[%s1810_s17 + $0x28] sm:$0xff] %v1344_v61   ;;  %v1339_v63 = vpack.c.bf16 %v1041_v62, %v1038_v60 }
 0x2b9   : > { %1359 = vst [vmem:[%s1810_s17 + $0x20] sm:$0xff] %v1339_v63  }
 0x2be   : > { %v1521_v0 = vpop.f32.mrf.mxu1 }
 0x2bf   : > { %v1062_v3 = vadd.f32 %v1521_v0, %v1272_v34 }
 0x2c0   : > { %v1053_v1 = vpop.f32.mrf.mxu1 }
 0x2c1   : > { %v1054_v6 = vadd.f32 %v1272_v34, %v1053_v1 }
 0x2c2   : > { %v1522_v2 = vpop.f32.mrf.mxu1 }
 0x2c3   : > { %v1065_v4 = vadd.f32 %v1522_v2, %v1272_v34 }
 0x2c4   : > { %v1056_v5 = vpop.f32.mrf.mxu1 }
 0x2c5   : > { %v1354_v7 = vpack.c.bf16 %v1065_v4, %v1062_v3  ;;  %v1057_v8 = vadd.f32 %v1272_v34, %v1056_v5 }
 0x2c7   : > { %1362 = vst [vmem:[%s1810_s17 + $0x38] sm:$0xff] %v1354_v7   ;;  %v1349_v9 = vpack.c.bf16 %v1057_v8, %v1054_v6 }
 0x2c9   : > { %1361 = vst [vmem:[%s1810_s17 + $0x30] sm:$0xff] %v1349_v9  }
 0x2ca PF: > { %s16_s23 = sadd.s32 1, %s1625_s23   ;;  %s1836_s21 = smov %s1621_s22 }
 0x2cb   : > { %p13_p5 = scmp.ge.s32.totalorder %s16_s23, 4   ;;  %s1837_s22 = smov %s1839_s24 }
 0x2cd   :  { %15 = sbr.rel (!%p13_p5) target bundleno = 2 (0x2), region = 83 }

</bundles_post_ra>
